<compile_context>
chip_gen: v7x
topology: tpu7x:2x2x1
jax: 0.10.0
libtpu: 0.0.40
codegen_flags: <defaults>
</compile_context>

<pallas_src>
import jax
import jax.numpy as jnp
import numpy as np
from jax.experimental import pallas as pl
from jax.experimental.pallas import tpu as pltpu


# ----------------------------- Pallas kernel --------------------------------

def reward_mlp_kernel(x_ref, w1_ref, b1_ref, w2_ref, b2_ref, w3_ref, b3_ref, o_ref):
    # x_ref:  (TB, D_in)   batch on sublanes, features on lanes (bf16 or f32)
    # w1_ref: (D_in, 128), b1_ref: (1, 128)
    # w2_ref: (128, 64),   b2_ref: (1, 64)
    # w3_ref: (1, 64),     b3_ref: (1, 1)
    # o_ref:  (1, TB)      batch on lanes (lane-dense store), f32
    x = x_ref[...]

    # Layer 1: (bf16 x bf16 or f32 x f32) MXU matmul, f32 accumulation.
    h1 = jnp.dot(x, w1_ref[...], preferred_element_type=jnp.float32) + b1_ref[...]
    h1 = jnp.maximum(h1, 0.0)

    # Layer 2: f32 activations vs f32 weights (default MXU precision; pass
    # precision=jax.lax.Precision.HIGHEST here if bit-parity with torch f32 matters).
    h2 = jnp.dot(h1, w2_ref[...], preferred_element_type=jnp.float32) + b2_ref[...]
    h2 = jnp.maximum(h2, 0.0)

    # Layer 3 (64 -> 1) off the MXU: VPU broadcast-multiply + XLU lane reduce run in
    # otherwise idle slots; an N=1 MXU matmul would waste full MXU passes.
    # TODO(synk): bundle-check that the (TB,) -> (1, TB) relayout below stays at
    # register level (no VMEM round trip); if not, switch to pltpu.einshape.
    y = jnp.sum(h2 * w3_ref[...], axis=1)                      # (TB,)
    o_ref[...] = y.reshape(o_ref.shape) + b3_ref[...]


# ------------------------------ wrapper --------------------------------------

def _round_up(x, m):
    return ((x + m - 1) // m) * m


_MAX_TB = 8192  # f32-safe tile cap even on v7x's 64 MiB VMEM


def reward_network_forward(state_action, params, *, tb=2048, cast_inputs_to_bf16=True):
    """state_action: (B, state_dim + action_dim). Returns (B, 1) float32."""
    w1t, b1, w2t, b2, w3, b3 = params
    B, d_in = state_action.shape

    if cast_inputs_to_bf16:
        # In an end-to-end jit this convert fuses with the producer of state_action;
        # x is ~90% of the kernel's HBM bytes so bf16 halves the dominant DMA stream.
        x = state_action.astype(jnp.bfloat16)
        w1t = w1t.astype(jnp.bfloat16)
        x_bytes = 2
    else:
        x = state_action.astype(jnp.float32)
        w1t = w1t.astype(jnp.float32)
        x_bytes = 4

    # Batch tile selection (no wrapper-side padding; ragged edges use Pallas's masked
    # edge block -- garbage rows in the last x tile are dropped by the masked store
    # and never feed a cross-row reduction):
    #  - B <= 512: single grid step, blocks equal the full array dims (exempt from the
    #    (8,128) rule), no padding needed.
    #  - B  > 512: lane-aligned tile, and at least 2 grid steps so v7x's two
    #    TensorCores both get a share of the "parallel" batch axis.
    tb_req = min(max(int(tb), 128), _MAX_TB)
    if B <= 512:
        tb_eff = B
        grid = (1,)
    else:
        tb_eff = min(_round_up(tb_req, 128), _round_up(pl.cdiv(B, 2), 128))
        grid = (pl.cdiv(B, tb_eff),)

    full = lambda shape: pl.BlockSpec(shape, lambda i: (0, 0))

    # Explicit VMEM budget: x double buffer + output double buffer + h1/h2 + params.
    vmem_est = (2 * tb_eff * d_in * x_bytes
                + 2 * tb_eff * 4
                + tb_eff * (128 + 64) * 4
                + (d_in * 128 + 128 * 64 + 64) * 4 + 4 * (128 + 64 + 1))
    vmem_limit = int(min(64 * 1024 * 1024, max(16 * 1024 * 1024, 4 * vmem_est)))

    flops = 2 * B * (d_in * 128 + 128 * 64 + 64)
    bytes_accessed = (B * d_in * x_bytes + B * 4
                      + d_in * 128 * x_bytes
                      + 4 * (128 + 128 * 64 + 64 + 64 + 1))

    out_row = pl.pallas_call(
        reward_mlp_kernel,
        out_shape=jax.ShapeDtypeStruct((1, B), jnp.float32),
        grid_spec=pltpu.PrefetchScalarGridSpec(
            num_scalar_prefetch=0,
            grid=grid,
            in_specs=[
                pl.BlockSpec((tb_eff, d_in), lambda i: (i, 0)),   # x tile over batch
                full(w1t.shape), full(b1.shape),
                full(w2t.shape), full(b2.shape),
                full(w3.shape), full(b3.shape),
            ],
            out_specs=pl.BlockSpec((1, tb_eff), lambda i: (0, i)),
        ),
        compiler_params=pltpu.CompilerParams(
            dimension_semantics=("parallel",),
            vmem_limit_bytes=vmem_limit),
        cost_estimate=pl.CostEstimate(
            flops=flops, transcendentals=0, bytes_accessed=bytes_accessed),
    )(x, w1t, b1, w2t, b2, w3, b3)

    return out_row.reshape(B, 1)


# --------------------------- parameter construction --------------------------

def orthogonal_init(key, rows, cols):
    """Mimics torch.nn.init.orthogonal_ for a 2D weight of shape (rows, cols)."""
    a = jax.random.normal(key, (max(rows, cols), min(rows, cols)), dtype=jnp.float32)
    q, r = jnp.linalg.qr(a)
    q = q * jnp.sign(jnp.diag(r))  # deterministic sign
    if rows < cols:
        q = q.T
    return q[:rows, :cols]


def make_reward_network_params(key, state_dim, action_dim):
    input_dim = state_dim + action_dim
    k1, k2, k3 = jax.random.split(key, 3)
    # torch Linear weights are (out, in). Layers 1/2 are stored transposed (in, out)
    # for the MXU; layer 3 stays as a (1, 64) row for the VPU reduce.
    w1 = orthogonal_init(k1, 128, input_dim)   # (128, input_dim)
    w2 = orthogonal_init(k2, 64, 128)          # (64, 128)
    w3 = orthogonal_init(k3, 1, 64)            # (1, 64)
    b1 = jnp.zeros((1, 128), jnp.float32)
    b2 = jnp.zeros((1, 64), jnp.float32)
    b3 = jnp.zeros((1, 1), jnp.float32)
    return (w1.T, b1, w2.T, b2, w3, b3)


# pure-JAX f32 reference for correctness checks
def reward_network_ref(state_action, params):
    w1t, b1, w2t, b2, w3, b3 = params
    x = state_action.astype(jnp.float32)
    h1 = jnp.maximum(x @ w1t + b1, 0.0)
    h2 = jnp.maximum(h1 @ w2t + b2, 0.0)
    # layer 3 written as an explicit contraction (== h2 @ w3.T + b3)
    return jnp.sum(h2 * w3, axis=-1, keepdims=True) + b3


if __name__ == "__main__":
    state_dim, action_dim = 8, 4
    d_in = state_dim + action_dim

    key = jax.random.PRNGKey(0)
    k_params, k_bias, k_x1, k_x2, k_x3 = jax.random.split(key, 5)

    params = make_reward_network_params(k_params, state_dim, action_dim)
    # The module initializes biases to 0; perturb them here so the numerical check
    # also exercises the bias path (as trained parameters would).
    w1t, b1, w2t, b2, w3, b3 = params
    kb1, kb2, kb3 = jax.random.split(k_bias, 3)
    params = (w1t, 0.1 * jax.random.normal(kb1, b1.shape, jnp.float32),
              w2t, 0.1 * jax.random.normal(kb2, b2.shape, jnp.float32),
              w3, 0.1 * jax.random.normal(kb3, b3.shape, jnp.float32))

    # 1) Small single-tile case, exact f32 path (tight tolerance).
    x_small = jax.random.normal(k_x1, (16, d_in), dtype=jnp.float32)
    out_small = jax.block_until_ready(
        reward_network_forward(x_small, params, cast_inputs_to_bf16=False))
    ref_small = reward_network_ref(x_small, params)
    np.testing.assert_allclose(np.asarray(out_small), np.asarray(ref_small),
                               rtol=1e-4, atol=1e-4)
    assert out_small.shape == (16, 1) and out_small.dtype == jnp.float32

    # 2) Ragged single-block case (B=300 <= 512), bf16 input path (loose tolerance:
    #    documented bf16-input precision tradeoff vs the f32 reference).
    x_mid = jax.random.normal(k_x2, (300, d_in), dtype=jnp.float32)
    out_mid = jax.block_until_ready(reward_network_forward(x_mid, params))
    ref_mid = reward_network_ref(x_mid, params)
    np.testing.assert_allclose(np.asarray(out_mid), np.asarray(ref_mid),
                               rtol=3e-2, atol=3e-2)
    assert out_mid.shape == (300, 1)

    # 3) Ragged multi-tile case: B=1000 -> tb_eff=512, 2 "parallel" grid steps
    #    (exercises the masked edge block and the v7x >=2-step split).
    x_big = jax.random.normal(k_x3, (1000, d_in), dtype=jnp.float32)
    out_big = jax.block_until_ready(reward_network_forward(x_big, params, tb=2048))
    ref_big = reward_network_ref(x_big, params)
    np.testing.assert_allclose(np.asarray(out_big), np.asarray(ref_big),
                               rtol=3e-2, atol=3e-2)
    assert out_big.shape == (1000, 1)

    print("KERNEL_OK")
</pallas_src>

<mosaic_0001>
module attributes {stable_mosaic.version = 11 : i64} {
  func.func @reward_mlp_kernel(%arg0: i32, %arg1: memref<16x12xf32, #tpu.memory_space<vmem>>, %arg2: memref<12x128xf32, #tpu.memory_space<vmem>>, %arg3: memref<1x128xf32, #tpu.memory_space<vmem>>, %arg4: memref<128x64xf32, #tpu.memory_space<vmem>>, %arg5: memref<1x64xf32, #tpu.memory_space<vmem>>, %arg6: memref<1x64xf32, #tpu.memory_space<vmem>>, %arg7: memref<1x1xf32, #tpu.memory_space<vmem>>, %arg8: memref<1x16xf32, #tpu.memory_space<vmem>>) attributes {dimension_semantics = [#tpu.dimension_semantics<parallel>], iteration_bounds = array<i64: 1>, scalar_prefetch = 0 : i64, scratch_operands = 0 : i64, tpu.core_type = #tpu.core_type<tc>, window_params = [{transform_indices = @transform_0, window_bounds = array<i64: 16, 12>}, {pipeline_mode = #tpu.pipeline_mode<synchronous>, transform_indices = @transform_1, window_bounds = array<i64: 12, 128>}, {pipeline_mode = #tpu.pipeline_mode<synchronous>, transform_indices = @transform_2, window_bounds = array<i64: 1, 128>}, {pipeline_mode = #tpu.pipeline_mode<synchronous>, transform_indices = @transform_3, window_bounds = array<i64: 128, 64>}, {pipeline_mode = #tpu.pipeline_mode<synchronous>, transform_indices = @transform_4, window_bounds = array<i64: 1, 64>}, {pipeline_mode = #tpu.pipeline_mode<synchronous>, transform_indices = @transform_5, window_bounds = array<i64: 1, 64>}, {pipeline_mode = #tpu.pipeline_mode<synchronous>, transform_indices = @transform_6, window_bounds = array<i64: 1, 1>}, {transform_indices = @transform_7, window_bounds = array<i64: 1, 16>}]} {
    %c0 = arith.constant 0 : index
    %c0_0 = arith.constant 0 : index
    %0 = vector.load %arg1[%c0, %c0_0] : memref<16x12xf32, #tpu.memory_space<vmem>>, vector<16x12xf32>
    %c0_1 = arith.constant 0 : index
    %c0_2 = arith.constant 0 : index
    %1 = vector.load %arg2[%c0_1, %c0_2] : memref<12x128xf32, #tpu.memory_space<vmem>>, vector<12x128xf32>
    %cst = arith.constant dense<0.000000e+00> : vector<16x128xf32>
    %2 = tpu.matmul %0, %1, %cst {dimension_numbers = #tpu.dot_dimension_numbers<[1], [0], [0], [1], [0, 0, 1, 1], [], []>} : vector<16x12xf32>, vector<12x128xf32>, vector<16x128xf32> -> vector<16x128xf32>
    %c0_3 = arith.constant 0 : index
    %c0_4 = arith.constant 0 : index
    %3 = vector.load %arg3[%c0_3, %c0_4] : memref<1x128xf32, #tpu.memory_space<vmem>>, vector<1x128xf32>
    %4 = vector.broadcast %3 : vector<1x128xf32> to vector<16x128xf32>
    %5 = arith.addf %2, %4 : vector<16x128xf32>
    %cst_5 = arith.constant 0.000000e+00 : f32
    %6 = vector.broadcast %cst_5 : f32 to vector<16x128xf32>
    %7 = arith.maximumf %5, %6 : vector<16x128xf32>
    %c0_6 = arith.constant 0 : index
    %c0_7 = arith.constant 0 : index
    %8 = vector.load %arg4[%c0_6, %c0_7] : memref<128x64xf32, #tpu.memory_space<vmem>>, vector<128x64xf32>
    %cst_8 = arith.constant dense<0.000000e+00> : vector<16x64xf32>
    %9 = tpu.matmul %7, %8, %cst_8 {dimension_numbers = #tpu.dot_dimension_numbers<[1], [0], [0], [1], [0, 0, 1, 1], [], []>} : vector<16x128xf32>, vector<128x64xf32>, vector<16x64xf32> -> vector<16x64xf32>
    %c0_9 = arith.constant 0 : index
    %c0_10 = arith.constant 0 : index
    %10 = vector.load %arg5[%c0_9, %c0_10] : memref<1x64xf32, #tpu.memory_space<vmem>>, vector<1x64xf32>
    %11 = vector.broadcast %10 : vector<1x64xf32> to vector<16x64xf32>
    %12 = arith.addf %9, %11 : vector<16x64xf32>
    %cst_11 = arith.constant 0.000000e+00 : f32
    %13 = vector.broadcast %cst_11 : f32 to vector<16x64xf32>
    %14 = arith.maximumf %12, %13 : vector<16x64xf32>
    %c0_12 = arith.constant 0 : index
    %c0_13 = arith.constant 0 : index
    %15 = vector.load %arg6[%c0_12, %c0_13] : memref<1x64xf32, #tpu.memory_space<vmem>>, vector<1x64xf32>
    %16 = vector.broadcast %15 : vector<1x64xf32> to vector<16x64xf32>
    %17 = arith.mulf %14, %16 : vector<16x64xf32>
    %cst_14 = arith.constant dense<0.000000e+00> : vector<16xf32>
    %18 = vector.multi_reduction <add>, %17, %cst_14 [1] : vector<16x64xf32> to vector<16xf32>
    %19 = vector.shape_cast %18 : vector<16xf32> to vector<1x16xf32>
    %c0_15 = arith.constant 0 : index
    %c0_16 = arith.constant 0 : index
    %20 = vector.load %arg7[%c0_15, %c0_16] : memref<1x1xf32, #tpu.memory_space<vmem>>, vector<1x1xf32>
    %21 = vector.broadcast %20 : vector<1x1xf32> to vector<1x16xf32>
    %22 = arith.addf %19, %21 : vector<1x16xf32>
    %c0_17 = arith.constant 0 : index
    %c0_18 = arith.constant 0 : index
    %23 = vector.load %arg8[%c0_17, %c0_18] : memref<1x16xf32, #tpu.memory_space<vmem>>, vector<1x16xf32>
    tpu.vector_store %arg8[%c0_17, %c0_18], %22 {strides = array<i32>} : memref<1x16xf32, #tpu.memory_space<vmem>>, vector<1x16xf32>,
    return
  }
  func.func @transform_0(%arg0: i32) -> (i32, i32) {
    %c0_i32 = arith.constant 0 : i32
    %c0_i32_0 = arith.constant 0 : i32
    return %arg0, %c0_i32 : i32, i32
  }
  func.func @transform_1(%arg0: i32) -> (i32, i32) {
    %c0_i32 = arith.constant 0 : i32
    %c0_i32_0 = arith.constant 0 : i32
    %c0_i32_1 = arith.constant 0 : i32
    return %c0_i32, %c0_i32_0 : i32, i32
  }
  func.func @transform_2(%arg0: i32) -> (i32, i32) {
    %c0_i32 = arith.constant 0 : i32
    %c0_i32_0 = arith.constant 0 : i32
    %c0_i32_1 = arith.constant 0 : i32
    return %c0_i32, %c0_i32_0 : i32, i32
  }
  func.func @transform_3(%arg0: i32) -> (i32, i32) {
    %c0_i32 = arith.constant 0 : i32
    %c0_i32_0 = arith.constant 0 : i32
    %c0_i32_1 = arith.constant 0 : i32
    return %c0_i32, %c0_i32_0 : i32, i32
  }
  func.func @transform_4(%arg0: i32) -> (i32, i32) {
    %c0_i32 = arith.constant 0 : i32
    %c0_i32_0 = arith.constant 0 : i32
    %c0_i32_1 = arith.constant 0 : i32
    return %c0_i32, %c0_i32_0 : i32, i32
  }
  func.func @transform_5(%arg0: i32) -> (i32, i32) {
    %c0_i32 = arith.constant 0 : i32
    %c0_i32_0 = arith.constant 0 : i32
    %c0_i32_1 = arith.constant 0 : i32
    return %c0_i32, %c0_i32_0 : i32, i32
  }
  func.func @transform_6(%arg0: i32) -> (i32, i32) {
    %c0_i32 = arith.constant 0 : i32
    %c0_i32_0 = arith.constant 0 : i32
    %c0_i32_1 = arith.constant 0 : i32
    return %c0_i32, %c0_i32_0 : i32, i32
  }
  func.func @transform_7(%arg0: i32) -> (i32, i32) {
    %c0_i32 = arith.constant 0 : i32
    %c0_i32_0 = arith.constant 0 : i32
    return %c0_i32, %arg0 : i32, i32
  }
}

</mosaic_0001>

<bundles_post_ra>
// kernel: tpu_custom_call.1
= control target key start
LH: loop header
LB: loop body
LE: loop exit
PB: predicated region body
PF: predicated region fallthrough
CT: control target
= control target key end

     0   :  { %s554_s0 = inlined_call_operand.vmem [shape: f32[16,12], index: 0, kind: input, shape index: {}]   ;;  %s555_s1 = inlined_call_operand.vmem [shape: f32[12,128], index: 1, kind: input, shape index: {}]   ;;  %s556_s2 = inlined_call_operand.vmem [shape: f32[1,128], index: 2, kind: input, shape index: {}]   ;;  %s557_s3 = inlined_call_operand.vmem [shape: f32[128,64], index: 3, kind: input, shape index: {}]   ;;  %s558_s4 = inlined_call_operand.vmem [shape: f32[1,64], index: 4, kind: input, shape index: {}]   ;;  %s559_s5 = inlined_call_operand.vmem [shape: f32[1,64], index: 5, kind: input, shape index: {}]   ;;  %s560_s6 = inlined_call_operand.<no memory space> [shape: f32[1,1], index: 6, kind: input, shape index: {}]   ;;  %s561_s7 = inlined_call_operand.hbm [shape: f32[1,16], index: 7, kind: output, shape index: {}]  }
   0x1   :  { %v12_v0 = vstv %s560_s6 }
   0x2   :  { %13 = vst [vmem:[#allocation2] sm:$0x1] %v12_v0 }
   0x3   :  { %v31_v1 = vld [vmem:[%s555_s1] sm:$0xff]  ;;  %v32_v2 = vld [vmem:[%s555_s1 + $0x8] sm:$0xf]  ;;  %vm47_vm0 = vcmask 1043456   ;;  %vm425_vm1 = vmmov 1   ;;  %vm40_vm3 = vcmask 97280  }
   0x4   :  { %v29_v3 = vld [vmem:[%s554_s0] sm:$0xff]  ;;  %v358_v4 = vpack.c.bf16 %v32_v2, %v31_v1  ;;  %vm359_vm2 = vmpackc.low %vm47_vm0, %vm425_vm1  ;;  %v129_v6 = vld [vmem:[%s557_s3 + $0x8] sm:$0xff] }
   0x5   :  { %v128_v5 = vld [vmem:[%s557_s3] sm:$0xff]  ;;  %320 = vmatprep.mubr.msk.f32.mxu0 %vm40_vm3, %v29_v3  ;;  %v130_v7 = vld [vmem:[%s557_s3 + $0x10] sm:$0xff]  ;;  %v131_v8 = vld [vmem:[%s557_s3 + $0x18] sm:$0xff] }
   0x6   :  { %360 = vmatprep.subr.msk.bf16.mxu0 %vm359_vm2, %v358_v4  ;;  %v364_v9 = vpack.c.bf16 %v129_v6, %v128_v5  ;;  %v368_v10 = vpack.c.bf16 %v131_v8, %v130_v7  ;;  %v30_v11 = vld [vmem:[%s554_s0 + $0x8] sm:$0xff]  ;;  %v132_v12 = vld [vmem:[%s557_s3 + $0x20] sm:$0xff] }
   0x7   :  { %363 = vmatpush3.bf16.msk.msra.mxu0 %vm359_vm2, %v358_v4  ;;  %v133_v13 = vld [vmem:[%s557_s3 + $0x28] sm:$0xff] }
   0x8   :  { %365 = vmatprep.subr.bf16.mxu1 %v364_v9 }
   0x9   :  { %367 = vmatpush3.bf16.msra.mxu1 %v364_v9 }
   0xa   :  { %14 = vsyncpa [#allocation4], 0  ;;  %321 = vmatmul.mubr.msk.f32.vlgmr.msra.gmra.mrb[0].mxu0 %vm40_vm3, %v30_v11  ;;  %369 = vmatprep.subr.bf16.mxu1 %v368_v10  ;;  %v372_v14 = vpack.c.bf16 %v133_v13, %v132_v12  ;;  %v134_v15 = vld [vmem:[%s557_s3 + $0x30] sm:$0xff]  ;;  %v135_v16 = vld [vmem:[%s557_s3 + $0x38] sm:$0xff]  ;;  %v426_v38 = vmov 0   ;;  %vm237_vm4 = vcmask 523264   ;;  %v250_v51 = vlaneseq }
   0xb   :  { %v376_v17 = vpack.c.bf16 %v135_v16, %v134_v15  ;;  %v136_v18 = vld [vmem:[%s557_s3 + $0x40] sm:$0xff]  ;;  %v137_v19 = vld [vmem:[%s557_s3 + $0x48] sm:$0xff]  ;;  %v138_v21 = vld [vmem:[%s557_s3 + $0x50] sm:$0xff]  ;;  %399 = vset.pattern.permute.xlu1 %v426_v38  ;;  %400 = vset.pattern.permute.xlu0 %v426_v38  ;;  %vm269_vm5 = vcmask 130112   ;;  %vm272_vm6 = vcmask 122880  }
   0xc   :  { %v380_v20 = vpack.c.bf16 %v137_v19, %v136_v18  ;;  %v139_v22 = vld [vmem:[%s557_s3 + $0x58] sm:$0xff]  ;;  %v140_v24 = vld [vmem:[%s557_s3 + $0x60] sm:$0xff]  ;;  %v141_v25 = vld [vmem:[%s557_s3 + $0x68] sm:$0xff]  ;;  %v251_v52 = vshrl.u32 %v250_v51, 7  ;;  %v259_v55 = vand.u32 127, %v250_v51 }
   0xd   :  { %371 = vmatpush3.bf16.msra.mxu1 %v368_v10  ;;  %v384_v23 = vpack.c.bf16 %v139_v22, %v138_v21  ;;  %v388_v26 = vpack.c.bf16 %v141_v25, %v140_v24  ;;  %v142_v27 = vld [vmem:[%s557_s3 + $0x70] sm:$0xff]  ;;  %v143_v28 = vld [vmem:[%s557_s3 + $0x78] sm:$0xff]  ;;  %v288_v30 = vld [vmem:[%s556_s2] ss:$0 sm:$0xff] }
   0xe   :  { %373 = vmatprep.subr.bf16.mxu1 %v372_v14  ;;  %v392_v29 = vpack.c.bf16 %v143_v28, %v142_v27  ;;  %v244_v37 = vld [vmem:[#allocation2] sm:$0x1]  ;;  %v252_v53 = vsub.s32 0, %v251_v52  ;;  %v264_v57 = vadd.s32 4294967288, %v259_v55  ;;  %v262_v59 = vsub.s32 %v259_v55, %v251_v52 }
   0xf   :  { %247 = vperm.xlu1 %399, %v244_v37   ;;  %v292_v39 = vld [vmem:[%s558_s4] ss:$0 sm:$0xff]  ;;  %s427_s4 = smov [#allocation3]  }
  0x10   :  { %v293_v44 = vld [vmem:[%s559_s5] ss:$0 sm:$0xff]  ;;  %v267_v61 = vsub.s32 %v264_v57, %v251_v52  ;;  %s280_s5 = sshll.u32 %s427_s4, 4  ;;  %s281_s5 = int_to_ptr.vmem [resolvable:$true] %s280_s5 }
  0x11   :  { %375 = vmatpush3.bf16.msra.mxu1 %v372_v14  ;;  %s401_s19 = scalar_lea.vmem %s281_s5, 16  ;;  %s405_s20 = scalar_lea.vmem %s281_s5, 32 }
  0x12   :  { %377 = vmatprep.subr.bf16.mxu1 %v376_v17  ;;  %p402_p0 = scmp.ne.s32.totalorder %s281_s5, %s401_s19  ;;  %p406_p1 = scmp.lt.s32.totalorder %s281_s5, %s281_s5 }
  0x13   :  { %p407_p2 = scmp.lt.s32.totalorder %s405_s20, %s401_s19 }
  0x15   :  { %379 = vmatpush3.bf16.msra.mxu1 %v376_v17  ;;  %p408_p3 = por %p407_p2, %p406_p1 }
  0x16   :  { %381 = vmatprep.subr.bf16.mxu1 %v380_v20 }
  0x17   :  { %p409_p4 = pnand %p408_p3, %p402_p0 }
  0x19   :  { %383 = vmatpush3.bf16.msra.mxu1 %v380_v20 }
  0x1a   :  { %385 = vmatprep.subr.bf16.mxu1 %v384_v23 }
  0x1d   :  { %387 = vmatpush3.bf16.msra.mxu1 %v384_v23 }
  0x1e   :  { %389 = vmatprep.subr.bf16.mxu1 %v388_v26 }
  0x21   :  { %391 = vmatpush3.bf16.msra.mxu1 %v388_v26 }
  0x22   :  { %393 = vmatprep.subr.bf16.mxu1 %v392_v29 }
  0x25   :  { %395 = vmatpush3.bf16.msra.mxu1 %v392_v29 }
  0x8e   :  { %v248_v54 = vpop.permute.xlu1 %247 }
  0x8f   :  { %v253_v56 = vrot.slane %v248_v54, %v252_v53 }
  0xdd   :  { %v322_v31 = vpop.f32.mrb[0].mxu0 }
  0xde   :  { %v123_v32 = vadd.f32 %v322_v31, %v288_v30  ;;  %v117_v33 = vpop.f32.mrb[1].mxu0 }
  0xdf   :  { %v118_v34 = vadd.f32 %v288_v30, %v117_v33 }
  0xe0   :  { %v127_v36 = vmax.f32 %v123_v32, 0.0 }
  0xe1   :  { %v126_v35 = vmax.f32 %v118_v34, 0.0 }
  0xe3   :  { %355 = vmatprep.mubr.f32.mxu1 %v126_v35 }
  0xe4   :  { %356 = vmatmul.mubr.f32.vlgmr.msra.gmra.mrb[0].mxu1 %v127_v36 }
 0x1b7   :  { %v357_v40 = vpop.f32.mrb[0].mxu1 }
 0x1b8   :  { %v223_v41 = vadd.f32 %v357_v40, %v292_v39  ;;  %v217_v42 = vpop.f32.mrb[1].mxu1 }
 0x1b9   :  { %v218_v43 = vadd.f32 %v292_v39, %v217_v42 }
 0x1ba   :  { %v227_v45 = vmax.f32 %v223_v41, 0.0 }
 0x1bb   :  { %v226_v46 = vmax.f32 %v218_v43, 0.0 }
 0x1bc   :  { %v236_v49 = vmul.f32 %v293_v44, %v227_v45 }
 0x1bd   :  { %v235_v47 = vmul.f32 %v293_v44, %v226_v46 }
 0x1be   :  { %v241_v50 = vsel %vm237_vm4, %v236_v49, 0.0 }
 0x1bf   :  { %v238_v48 = vsel %vm237_vm4, %v235_v47, 0.0 }
 0x1c0   :  { %239 = vadd.xlane.f32.xlu0 %v238_v48 }
 0x1c4   :  { %242 = vadd.xlane.f32.xlu0 %v241_v50 }
 0x24d   :  { %v240_v58 = vpop.xlane.xlu0 %239 }
 0x24e   :  { %v254_v60 = vadd.f32 %v253_v56, %v240_v58 }
 0x250   :  { %v263_v0 = vrot.slane %v254_v60, %v262_v59 }
 0x251   :  { %v243_v62 = vpop.xlane.xlu0 %242 }
 0x252   :  { %v255_v63 = vadd.f32 %v253_v56, %v243_v62 }
 0x254   :  { %v268_v1 = vrot.slane %v255_v63, %v267_v61 }
 0x256   :  { %v270_v2 = vsel %vm269_vm5, %v268_v1, %v263_v0 }
 0x257   :  { %273 = vst.msk [vmem:[#allocation3] sm:$0x1] %vm272_vm6, %v270_v2 }
 0x258   :  { %412 = shalt.err (!%p409_p4)
}
 0x259   :  { %s413_s0 = scalar_lea.hbm %s561_s7, 16 }
 0x25a   :  { %p414_p5 = scmp.ne.s32.totalorder %s561_s7, %s413_s0  ;;  %p417_p6 = scmp.lt.u32.totalorder %s413_s0, %s561_s7 }
 0x25c   :  { %p419_p7 = pnand %p417_p6, %p414_p5 }
 0x25e   :  { %422 = shalt.err (!%p419_p7)
}
 0x25f   :  { %283 = dma.vmem_to_hbm [thread:$0]  %s281_s5, 16, %s561_s7, [#allocation4]  }
 0x260   :  { %423 = dma.done.wait [#allocation4], 16  }
 0x261   :  { %424 = vsyncadd [#allocation4], 4294967280 }
 0x262   :  { %287 = vsyncpa [#allocation4], 1 }

</bundles_post_ra>
